<compile_context>
chip_gen: v7x
topology: tpu7x:2x2x1
jax: 0.10.0
libtpu: 0.0.40
codegen_flags: <defaults>
</compile_context>

<pallas_src>
import math
import jax
import jax.numpy as jnp
from jax.experimental import pallas as pl
from jax.experimental.pallas import tpu as pltpu


_SQRT_2_OVER_PI = 0.7978845608028654


def _gelu_tanh(x):
    # Matches torch.nn.GELU(approximate='tanh'), computed in f32.
    return 0.5 * x * (1.0 + jnp.tanh(_SQRT_2_OVER_PI * (x + 0.044715 * x * x * x)))


def mlp_kernel(x_ref, wfc_ref, bfc_ref, wproj_ref, bproj_ref, o_ref, acc_ref):
    # x_ref:     (tm, D)  bf16        wfc_ref:   (D, th)  bf16
    # bfc_ref:   (1, th)  f32         wproj_ref: (th, D)  bf16
    # bproj_ref: (1, D)   f32         o_ref:     (tm, D)  out dtype
    # acc_ref:   (tm, D)  f32 VMEM scratch, resident across the H (j) axis.
    j = pl.program_id(1)

    @pl.when(j == 0)
    def _():
        acc_ref[...] = jnp.zeros_like(acc_ref)

    # First matmul (bf16 x bf16 -> f32), bias slice, GELU in f32.
    h = jnp.dot(x_ref[...], wfc_ref[...],
                preferred_element_type=jnp.float32) + bfc_ref[...]
    g = _gelu_tanh(h)

    # Second matmul: cast back to bf16 for the MXU, accumulate in f32.
    acc_ref[...] += jnp.dot(g.astype(wproj_ref.dtype), wproj_ref[...],
                            preferred_element_type=jnp.float32)

    @pl.when(j == pl.num_programs(1) - 1)
    def _():
        o_ref[...] = (acc_ref[...] + bproj_ref[...]).astype(o_ref.dtype)


def _round_up(x, m):
    return (x + m - 1) // m * m


def _chip_config():
    """Returns (tm_target, th_target, vmem_budget_bytes, tensorcores_per_chip)."""
    try:
        kind = jax.devices()[0].device_kind.lower()
    except Exception:
        kind = ""
    if "v7" in kind or "7x" in kind:
        # 64 MiB VMEM, ~3.2 TB/s HBM, 2 TCs -> modest tm, tight VMEM budget.
        return 512, 256, 52 << 20, 2
    if "v6" in kind:
        # 128 MiB VMEM, ~1.4 TB/s HBM -> needs a large row tile to stay MXU-bound.
        return 1024, 512, 100 << 20, 1
    if "v5" in kind:
        # 128 MiB VMEM, ~0.8 TB/s HBM -> tm=512 is comfortably compute-bound.
        return 512, 256, 100 << 20, 1
    # Unknown backend: conservative.
    return 512, 256, 48 << 20, 1


def _pick_hidden_tile(H, th_target):
    """Largest multiple of 128 that divides H and is <= th_target, else full H."""
    if H % 128 != 0:
        return H  # toy / non-lane-aligned H: use the full dim (allowed by BlockSpec)
    th = max(128, (min(th_target, H) // 128) * 128)
    while H % th != 0:
        th -= 128
    return th


def _choose_tiles(M, D, H, out_itemsize, tm_target, th_target, budget, n_cores):
    th = _pick_hidden_tile(H, th_target)

    # Row tile: multiple of 8; bound padding waste to ~25% of the real rows.
    tm = min(tm_target, _round_up(M, 8))
    while tm > 256 and (_round_up(M, tm) - M) * 4 > M:
        tm //= 2
    # Multi-TensorCore chips: keep at least 2 row tiles so the "parallel"
    # M axis gives every core some work.
    while n_cores > 1 and _round_up(M, tm) // tm < 2 and tm > 8:
        tm = max(8, _round_up(tm // 2, 8))

    def footprint(tm_, th_, wbuf_):
        bf16 = 2
        return (2 * tm_ * D * bf16             # x, double-buffered
                + wbuf_ * D * th_ * bf16       # w_fc slices
                + wbuf_ * th_ * D * bf16       # w_proj slices
                + 2 * th_ * 4 + D * 4          # bias slices (f32)
                + 2 * tm_ * D * out_itemsize   # output, double-buffered
                + tm_ * D * 4)                 # f32 accumulator scratch

    wbuf = 3  # deeper buffering on the streamed weights, if it fits
    while footprint(tm, th, wbuf) > budget:
        if wbuf > 2:
            wbuf = 2                               # drop the extra weight buffer
        elif H % 128 == 0 and th > 128:
            th = _pick_hidden_tile(H, th - 128)    # cheapest shrink: no extra HBM traffic
        elif tm > 8:
            tm = max(8, _round_up(tm // 2, 8))
        else:
            break

    M_pad = _round_up(M, tm)
    return tm, th, wbuf, M_pad


def _weight_spec(shape, index_map, nbuf):
    """BlockSpec for a streamed weight slice, with optional 3-deep buffering."""
    if nbuf > 2:
        try:
            return pl.BlockSpec(shape, index_map, pipeline_mode=pl.Buffered(nbuf))
        except Exception:
            pass  # older Pallas without pipeline_mode: fall back to default (2)
    return pl.BlockSpec(shape, index_map)


def mlp_forward(x, w_fc, b_fc, w_proj, b_proj, *,
                compute_dtype=jnp.bfloat16, out_dtype=None):
    """x: (B, T, D). w_fc: (D, 4D), b_fc: (4D,), w_proj: (4D, D), b_proj: (D,)."""
    B, T, D = x.shape
    H = w_fc.shape[1]  # 4 * D
    M = B * T
    # Matching the torch module, output dtype follows the input by default.
    # Pass out_dtype=jnp.bfloat16 to halve writeback + output VMEM footprint.
    out_dtype = x.dtype if out_dtype is None else jnp.dtype(out_dtype)
    out_isz = jnp.dtype(out_dtype).itemsize

    tm_t, th_t, vmem_budget, n_cores = _chip_config()
    tm, th, wbuf, M_pad = _choose_tiles(M, D, H, out_isz,
                                        tm_t, th_t, vmem_budget, n_cores)
    num_i, num_j = M_pad // tm, H // th
    if num_i * num_j < 3:
        wbuf = 2  # no point in >2 weight buffers for a 1-2 step grid

    x2 = x.reshape(M, D)
    if M_pad != M:
        x2 = jnp.pad(x2, ((0, M_pad - M), (0, 0)))
    x2 = x2.astype(compute_dtype)
    w_fc_c = w_fc.astype(compute_dtype)
    w_proj_c = w_proj.astype(compute_dtype)
    b_fc2 = b_fc.reshape(1, H).astype(jnp.float32)
    b_proj2 = b_proj.reshape(1, D).astype(jnp.float32)

    w_isz = jnp.dtype(compute_dtype).itemsize
    cost = pl.CostEstimate(
        flops=4 * M_pad * D * H,
        transcendentals=M_pad * H,
        bytes_accessed=(
            M_pad * D * w_isz                 # x: one read per row tile
            + num_i * 2 * D * H * w_isz       # w_fc + w_proj: re-streamed per row tile
            + num_i * 4 * (H + D)             # bias slices (f32)
            + M_pad * D * out_isz))           # output writeback

    out = pl.pallas_call(
        mlp_kernel,
        out_shape=jax.ShapeDtypeStruct((M_pad, D), out_dtype),
        grid_spec=pltpu.PrefetchScalarGridSpec(
            num_scalar_prefetch=0,
            grid=(num_i, num_j),              # rows parallel, H reduction last
            in_specs=[
                pl.BlockSpec((tm, D), lambda i, j: (i, 0)),        # x row tile
                _weight_spec((D, th), lambda i, j: (0, j), wbuf),  # w_fc slice
                pl.BlockSpec((1, th), lambda i, j: (0, j)),        # b_fc slice
                _weight_spec((th, D), lambda i, j: (j, 0), wbuf),  # w_proj slice
                pl.BlockSpec((1, D), lambda i, j: (0, 0)),         # b_proj
            ],
            out_specs=pl.BlockSpec((tm, D), lambda i, j: (i, 0)),
            scratch_shapes=[pltpu.VMEM((tm, D), jnp.float32)],
        ),
        compiler_params=pltpu.CompilerParams(
            dimension_semantics=("parallel", "arbitrary"),
            vmem_limit_bytes=int(vmem_budget)),
        cost_estimate=cost,
    )(x2, w_fc_c, b_fc2, w_proj_c, b_proj2)

    if M_pad != M:
        out = out[:M]
    return out.reshape(B, T, D)


def init_params(key, n_embd):
    """Deterministic init mimicking nn.Linear's uniform(-1/sqrt(fan_in), ...)."""
    h = 4 * n_embd
    k1, k2, k3, k4 = jax.random.split(key, 4)
    bound_fc = 1.0 / math.sqrt(n_embd)
    bound_proj = 1.0 / math.sqrt(h)
    w_fc = jax.random.uniform(k1, (n_embd, h), jnp.float32,
                              minval=-bound_fc, maxval=bound_fc)
    b_fc = jax.random.uniform(k2, (h,), jnp.float32,
                              minval=-bound_fc, maxval=bound_fc)
    w_proj = jax.random.uniform(k3, (h, n_embd), jnp.float32,
                                minval=-bound_proj, maxval=bound_proj)
    b_proj = jax.random.uniform(k4, (n_embd,), jnp.float32,
                                minval=-bound_proj, maxval=bound_proj)
    return w_fc, b_fc, w_proj, b_proj


if __name__ == "__main__":
    B, T, n_embd = 2, 8, 32

    key = jax.random.PRNGKey(0)
    kx, kp = jax.random.split(key)
    x = jax.random.normal(kx, (B, T, n_embd), jnp.float32)
    w_fc, b_fc, w_proj, b_proj = init_params(kp, n_embd)

    y = mlp_forward(x, w_fc, b_fc, w_proj, b_proj)
    jax.block_until_ready(y)

    # Reference in plain f32 JAX (matches torch GELU(approximate='tanh')).
    h_ref = x.reshape(-1, n_embd) @ w_fc + b_fc
    g_ref = 0.5 * h_ref * (1.0 + jnp.tanh(
        _SQRT_2_OVER_PI * (h_ref + 0.044715 * h_ref ** 3)))
    y_ref = (g_ref @ w_proj + b_proj).reshape(B, T, n_embd)

    # bf16 compute with f32 accumulation -> relaxed tolerance vs f32 reference.
    assert y.shape == y_ref.shape
    assert jnp.allclose(y, y_ref, atol=3e-2, rtol=3e-2), "mismatch vs reference"

    print("KERNEL_OK")
</pallas_src>

<mosaic_0001>
module attributes {stable_mosaic.version = 11 : i64} {
  func.func @mlp_kernel(%arg0: i32, %arg1: i32, %arg2: memref<16x32xbf16, #tpu.memory_space<vmem>>, %arg3: memref<32x128xbf16, #tpu.memory_space<vmem>>, %arg4: memref<1x128xf32, #tpu.memory_space<vmem>>, %arg5: memref<128x32xbf16, #tpu.memory_space<vmem>>, %arg6: memref<1x32xf32, #tpu.memory_space<vmem>>, %arg7: memref<16x32xf32, #tpu.memory_space<vmem>>, %arg8: memref<16x32xf32, #tpu.memory_space<vmem>>) attributes {dimension_semantics = [#tpu.dimension_semantics<parallel>, #tpu.dimension_semantics<arbitrary>], iteration_bounds = array<i64: 1, 1>, scalar_prefetch = 0 : i64, scratch_operands = 1 : i64, tpu.core_type = #tpu.core_type<tc>, window_params = [{transform_indices = @transform_0, window_bounds = array<i64: 16, 32>}, {transform_indices = @transform_1, window_bounds = array<i64: 32, 128>}, {transform_indices = @transform_2, window_bounds = array<i64: 1, 128>}, {transform_indices = @transform_3, window_bounds = array<i64: 128, 32>}, {pipeline_mode = #tpu.pipeline_mode<synchronous>, transform_indices = @transform_4, window_bounds = array<i64: 1, 32>}, {transform_indices = @transform_5, window_bounds = array<i64: 16, 32>}]} {
    %c0_i32 = arith.constant 0 : i32
    %0 = arith.cmpi eq, %arg1, %c0_i32 : i32
    %1 = arith.extui %0 : i1 to i32
    %c0_i32_0 = arith.constant 0 : i32
    %2 = arith.cmpi ne, %1, %c0_i32_0 : i32
    scf.if %2 {
      %cst_19 = arith.constant 0.000000e+00 : f32
      %31 = vector.broadcast %cst_19 : f32 to vector<16x32xf32>
      %c0_20 = arith.constant 0 : index
      %c0_21 = arith.constant 0 : index
      %32 = vector.load %arg8[%c0_20, %c0_21] : memref<16x32xf32, #tpu.memory_space<vmem>>, vector<16x32xf32>
      tpu.vector_store %arg8[%c0_20, %c0_21], %31 {strides = array<i32>} : memref<16x32xf32, #tpu.memory_space<vmem>>, vector<16x32xf32>,
    } else {
    }
    %c0 = arith.constant 0 : index
    %c0_1 = arith.constant 0 : index
    %3 = vector.load %arg2[%c0, %c0_1] : memref<16x32xbf16, #tpu.memory_space<vmem>>, vector<16x32xbf16>
    %c0_2 = arith.constant 0 : index
    %c0_3 = arith.constant 0 : index
    %4 = vector.load %arg3[%c0_2, %c0_3] : memref<32x128xbf16, #tpu.memory_space<vmem>>, vector<32x128xbf16>
    %cst = arith.constant dense<0.000000e+00> : vector<16x128xf32>
    %5 = tpu.matmul %3, %4, %cst {dimension_numbers = #tpu.dot_dimension_numbers<[1], [0], [0], [1], [0, 0, 1, 1], [], []>} : vector<16x32xbf16>, vector<32x128xbf16>, vector<16x128xf32> -> vector<16x128xf32>
    %c0_4 = arith.constant 0 : index
    %c0_5 = arith.constant 0 : index
    %6 = vector.load %arg4[%c0_4, %c0_5] : memref<1x128xf32, #tpu.memory_space<vmem>>, vector<1x128xf32>
    %7 = vector.broadcast %6 : vector<1x128xf32> to vector<16x128xf32>
    %8 = arith.addf %5, %7 : vector<16x128xf32>
    %cst_6 = arith.constant 5.000000e-01 : f32
    %9 = vector.broadcast %cst_6 : f32 to vector<16x128xf32>
    %10 = arith.mulf %9, %8 : vector<16x128xf32>
    %cst_7 = arith.constant 4.471500e-02 : f32
    %11 = vector.broadcast %cst_7 : f32 to vector<16x128xf32>
    %12 = arith.mulf %11, %8 : vector<16x128xf32>
    %13 = arith.mulf %12, %8 : vector<16x128xf32>
    %14 = arith.mulf %13, %8 : vector<16x128xf32>
    %15 = arith.addf %8, %14 : vector<16x128xf32>
    %cst_8 = arith.constant 0.797884583 : f32
    %16 = vector.broadcast %cst_8 : f32 to vector<16x128xf32>
    %17 = arith.mulf %16, %15 : vector<16x128xf32>
    %18 = math.tanh %17 : vector<16x128xf32>
    %cst_9 = arith.constant 1.000000e+00 : f32
    %19 = vector.broadcast %cst_9 : f32 to vector<16x128xf32>
    %20 = arith.addf %19, %18 : vector<16x128xf32>
    %21 = arith.mulf %10, %20 : vector<16x128xf32>
    %c0_10 = arith.constant 0 : index
    %c0_11 = arith.constant 0 : index
    %22 = vector.load %arg8[%c0_10, %c0_11] : memref<16x32xf32, #tpu.memory_space<vmem>>, vector<16x32xf32>
    %23 = arith.truncf %21 : vector<16x128xf32> to vector<16x128xbf16>
    %c0_12 = arith.constant 0 : index
    %c0_13 = arith.constant 0 : index
    %24 = vector.load %arg5[%c0_12, %c0_13] : memref<128x32xbf16, #tpu.memory_space<vmem>>, vector<128x32xbf16>
    %cst_14 = arith.constant dense<0.000000e+00> : vector<16x32xf32>
    %25 = tpu.matmul %23, %24, %cst_14 {dimension_numbers = #tpu.dot_dimension_numbers<[1], [0], [0], [1], [0, 0, 1, 1], [], []>} : vector<16x128xbf16>, vector<128x32xbf16>, vector<16x32xf32> -> vector<16x32xf32>
    %26 = arith.addf %22, %25 : vector<16x32xf32>
    %c0_15 = arith.constant 0 : index
    %c0_16 = arith.constant 0 : index
    %27 = vector.load %arg8[%c0_15, %c0_16] : memref<16x32xf32, #tpu.memory_space<vmem>>, vector<16x32xf32>
    tpu.vector_store %arg8[%c0_15, %c0_16], %26 {strides = array<i32>} : memref<16x32xf32, #tpu.memory_space<vmem>>, vector<16x32xf32>,
    %c0_i32_17 = arith.constant 0 : i32
    %28 = arith.cmpi eq, %arg1, %c0_i32_17 : i32
    %29 = arith.extui %28 : i1 to i32
    %c0_i32_18 = arith.constant 0 : i32
    %30 = arith.cmpi ne, %29, %c0_i32_18 : i32
    scf.if %30 {
      %c0_19 = arith.constant 0 : index
      %c0_20 = arith.constant 0 : index
      %31 = vector.load %arg8[%c0_19, %c0_20] : memref<16x32xf32, #tpu.memory_space<vmem>>, vector<16x32xf32>
      %c0_21 = arith.constant 0 : index
      %c0_22 = arith.constant 0 : index
      %32 = vector.load %arg6[%c0_21, %c0_22] : memref<1x32xf32, #tpu.memory_space<vmem>>, vector<1x32xf32>
      %33 = vector.broadcast %32 : vector<1x32xf32> to vector<16x32xf32>
      %34 = arith.addf %31, %33 : vector<16x32xf32>
      %c0_23 = arith.constant 0 : index
      %c0_24 = arith.constant 0 : index
      %35 = vector.load %arg7[%c0_23, %c0_24] : memref<16x32xf32, #tpu.memory_space<vmem>>, vector<16x32xf32>
      tpu.vector_store %arg7[%c0_23, %c0_24], %34 {strides = array<i32>} : memref<16x32xf32, #tpu.memory_space<vmem>>, vector<16x32xf32>,
    } else {
    }
    return
  }
  func.func @transform_0(%arg0: i32, %arg1: i32) -> (i32, i32) {
    %c0_i32 = arith.constant 0 : i32
    %c0_i32_0 = arith.constant 0 : i32
    return %arg0, %c0_i32 : i32, i32
  }
  func.func @transform_1(%arg0: i32, %arg1: i32) -> (i32, i32) {
    %c0_i32 = arith.constant 0 : i32
    %c0_i32_0 = arith.constant 0 : i32
    return %c0_i32, %arg1 : i32, i32
  }
  func.func @transform_2(%arg0: i32, %arg1: i32) -> (i32, i32) {
    %c0_i32 = arith.constant 0 : i32
    %c0_i32_0 = arith.constant 0 : i32
    return %c0_i32, %arg1 : i32, i32
  }
  func.func @transform_3(%arg0: i32, %arg1: i32) -> (i32, i32) {
    %c0_i32 = arith.constant 0 : i32
    %c0_i32_0 = arith.constant 0 : i32
    return %arg1, %c0_i32 : i32, i32
  }
  func.func @transform_4(%arg0: i32, %arg1: i32) -> (i32, i32) {
    %c0_i32 = arith.constant 0 : i32
    %c0_i32_0 = arith.constant 0 : i32
    %c0_i32_1 = arith.constant 0 : i32
    return %c0_i32, %c0_i32_0 : i32, i32
  }
  func.func @transform_5(%arg0: i32, %arg1: i32) -> (i32, i32) {
    %c0_i32 = arith.constant 0 : i32
    %c0_i32_0 = arith.constant 0 : i32
    return %arg0, %c0_i32 : i32, i32
  }
}

</mosaic_0001>

<bundles_post_ra>
// kernel: tpu_custom_call.1
= control target key start
LH: loop header
LB: loop body
LE: loop exit
PB: predicated region body
PF: predicated region fallthrough
CT: control target
= control target key end

     0   :  { %v364_v1 = vmov 0.0   ;;  %vm365_vm0 = vmmov 0   ;;  %vm26_vm1 = vcmask 261120   ;;  %s457_s0 = inlined_call_operand.vmem [shape: bf16[16,32], index: 0, kind: input, shape index: {}]   ;;  %s458_s1 = inlined_call_operand.vmem [shape: bf16[32,128], index: 1, kind: input, shape index: {}]   ;;  %s459_s2 = inlined_call_operand.vmem [shape: f32[1,128], index: 2, kind: input, shape index: {}]   ;;  %s460_s3 = inlined_call_operand.vmem [shape: bf16[128,32], index: 3, kind: input, shape index: {}]   ;;  %s461_s4 = inlined_call_operand.vmem [shape: f32[1,32], index: 4, kind: input, shape index: {}]   ;;  %s462_s5 = inlined_call_operand.hbm [shape: f32[16,32], index: 5, kind: output, shape index: {}]  }
   0x1   :  { %v325_v0 = vld [vmem:[%s458_s1] sm:$0xff]   ;;  %292 = vmatprep.subr.bf16.mxu0 %v364_v1  ;;  %300 = vmatprep.subr.bf16.mxu1 %v364_v1  ;;  %v326_v2 = vld [vmem:[%s458_s1 + $0x8] sm:$0xff]   ;;  %27 = vst.msk [vmem:[#allocation2] sm:$0xff] %vm26_vm1, %v364_v1  ;;  %28 = vst.msk [vmem:[#allocation2 + $0x8] sm:$0xff] %vm26_vm1, %v364_v1 }
   0x2   :  { %293 = vmatpush3.bf16.msra.mxu0 %v325_v0  ;;  %296 = vmatprep.mubr.msk.bf16.mxu0 %vm365_vm0, %v364_v1  ;;  %v327_v3 = vld [vmem:[%s457_s0] sm:$0xff]  }
   0x3   :  { %294 = vmatprep.subr.bf16.mxu0 %v364_v1  ;;  %316 = vmatprep.mubr.msk.bf16.mxu1 %vm365_vm0, %v364_v1 }
   0x6   :  { %295 = vmatpush3.bf16.msra.mxu0 %v326_v2 }
   0x7   :  { %10 = vsyncpa [#allocation4], 0  ;;  %v328_v4 = vld [vmem:[%s460_s3] sm:$0xff]   ;;  %v329_v5 = vld [vmem:[%s460_s3 + $0x8] sm:$0xff]   ;;  %s366_s15 = smov [#allocation3]  }
   0x8   :  { %301 = vmatpush3.bf16.msra.mxu1 %v328_v4  ;;  %v330_v6 = vld [vmem:[%s460_s3 + $0x10] sm:$0xff]   ;;  %v331_v7 = vld [vmem:[%s460_s3 + $0x18] sm:$0xff]   ;;  %v332_v8 = vld [vmem:[%s460_s3 + $0x20] sm:$0xff]   ;;  %s255_s16 = sshll.u32 %s366_s15, 4  ;;  %s256_s16 = int_to_ptr.vmem [resolvable:$true] %s255_s16 }
   0x9   :  { %297 = vmatmul.mubr.msk.bf16.vlgmr.msra.gmra.mrb[0].mxu0 %vm26_vm1, %v327_v3  ;;  %302 = vmatprep.subr.bf16.mxu1 %v364_v1  ;;  %v333_v9 = vld [vmem:[%s460_s3 + $0x28] sm:$0xff]   ;;  %v334_v10 = vld [vmem:[%s460_s3 + $0x30] sm:$0xff]   ;;  %v335_v11 = vld [vmem:[%s460_s3 + $0x38] sm:$0xff]   ;;  %s340_s17 = scalar_lea.vmem %s256_s16, 256  ;;  %p345_p1 = scmp.lt.s32.totalorder %s256_s16, %s256_s16 }
   0xa   :  { %v266_v12 = vld [vmem:[%s459_s2] ss:$0 sm:$0xff]  ;;  %v123_v40 = vld [vmem:[#allocation2 + $0x8] sm:$0xff]  ;;  %p341_p0 = scmp.ne.s32.totalorder %s256_s16, %s340_s17  ;;  %p346_p2 = scmp.lt.s32.totalorder %s340_s17, %s340_s17 }
   0xb   :  { %v122_v38 = vld [vmem:[#allocation2] sm:$0xff] }
   0xc   :  { %303 = vmatpush3.bf16.msra.mxu1 %v329_v5  ;;  %v279_v46 = vld [vmem:[%s461_s4] ss:$0 sm:$0xff]  ;;  %p347_p3 = por %p346_p2, %p345_p1 }
   0xd   :  { %304 = vmatprep.subr.bf16.mxu1 %v364_v1 }
   0xe   :  { %p348_p4 = pnand %p347_p3, %p341_p0 }
  0x10   :  { %305 = vmatpush3.bf16.msra.mxu1 %v330_v6 }
  0x11   :  { %306 = vmatprep.subr.bf16.mxu1 %v364_v1 }
  0x14   :  { %307 = vmatpush3.bf16.msra.mxu1 %v331_v7 }
  0x15   :  { %308 = vmatprep.subr.bf16.mxu1 %v364_v1 }
  0x18   :  { %309 = vmatpush3.bf16.msra.mxu1 %v332_v8 }
  0x19   :  { %310 = vmatprep.subr.bf16.mxu1 %v364_v1 }
  0x1c   :  { %311 = vmatpush3.bf16.msra.mxu1 %v333_v9 }
  0x1d   :  { %312 = vmatprep.subr.bf16.mxu1 %v364_v1 }
  0x20   :  { %313 = vmatpush3.bf16.msra.mxu1 %v334_v10 }
  0x21   :  { %314 = vmatprep.subr.bf16.mxu1 %v364_v1 }
  0x24   :  { %315 = vmatpush3.bf16.msra.mxu1 %v335_v11 }
  0xdc   :  { %v97_v13 = vpop.f32.mrb[0].mxu0 }
  0xdd   :  { %v98_v14 = vadd.f32 %v266_v12, %v97_v13  ;;  %v298_v15 = vpop.f32.mrb[1].mxu0 }
  0xde   :  { %v100_v16 = vpop.f32.mrb[2].mxu0 }
  0xdf   :  { %v106_v17 = vmul.f32 0.044715, %v98_v14  ;;  %v101_v18 = vadd.f32 %v266_v12, %v100_v16  ;;  %v299_v19 = vpop.f32.mrb[3].mxu0  ;;  %v104_v32 = vmul.f32 0.5, %v98_v14 }
  0xe1   :  { %v108_v20 = vmul.f32 %v106_v17, %v98_v14  ;;  %v107_v21 = vmul.f32 0.044715, %v101_v18  ;;  %v105_v33 = vmul.f32 0.5, %v101_v18 }
  0xe3   :  { %v110_v22 = vmul.f32 %v108_v20, %v98_v14  ;;  %v109_v23 = vmul.f32 %v107_v21, %v101_v18 }
  0xe5   :  { %v111_v24 = vmul.f32 %v109_v23, %v101_v18  ;;  %v112_v25 = vadd.f32 %v110_v22, %v98_v14 }
  0xe7   :  { %v113_v26 = vadd.f32 %v111_v24, %v101_v18  ;;  %v114_v27 = vmul.f32 0.7978846, %v112_v25 }
  0xe9   :  { %v115_v28 = vmul.f32 0.7978846, %v113_v26  ;;  %336 = vtanh.f32 %v114_v27 }
  0xeb   :  { %338 = vtanh.f32 %v115_v28 }
  0xf3   :  { %v337_v29 = vpop.eup %336 }
  0xf4   :  { %v118_v30 = vadd.f32 1.0, %v337_v29 }
  0xf5   :  { %v339_v31 = vpop.eup %338 }
  0xf6   :  { %v119_v34 = vadd.f32 1.0, %v339_v31  ;;  %v120_v35 = vmul.f32 %v118_v30, %v104_v32 }
  0xf8   :  { %v121_v36 = vmul.f32 %v119_v34, %v105_v33 }
  0xfa   :  { %v124_v37 = vpack.c.bf16 %v121_v36, %v120_v35 }
  0xfc   :  { %317 = vmatmul.mubr.bf16.vlgmr.msra.gmra.mrb[0].mxu1 %v124_v37 }
 0x1cf   :  { %v223_v39 = vpop.f32.mrb[0].mxu1 }
 0x1d0   :  { %v230_v41 = vadd.f32 %v223_v39, %v122_v38  ;;  %v318_v42 = vpop.f32.mrb[1].mxu1 }
 0x1d1   :  { %v226_v43 = vpop.f32.mrb[2].mxu1 }
 0x1d2   :  { %232 = vst.msk [vmem:[#allocation2] sm:$0xff] %vm26_vm1, %v230_v41  ;;  %v231_v44 = vadd.f32 %v226_v43, %v123_v40  ;;  %v319_v45 = vpop.f32.mrb[3].mxu1 }
 0x1d4   :  { %233 = vst.msk [vmem:[#allocation2 + $0x8] sm:$0xff] %vm26_vm1, %v231_v44 }
 0x1d9   :  { %v237_v47 = vld [vmem:[#allocation2] sm:$0xff] }
 0x1da   :  { %v246_v48 = vadd.f32 %v279_v46, %v237_v47 }
 0x1db   :  { %v238_v49 = vld [vmem:[#allocation2 + $0x8] sm:$0xff] }
 0x1dc   :  { %v247_v50 = vadd.f32 %v279_v46, %v238_v49  ;;  %248 = vst.msk [vmem:[#allocation3] sm:$0xff] %vm26_vm1, %v246_v48 }
 0x1de   :  { %249 = vst.msk [vmem:[#allocation3 + $0x8] sm:$0xff] %vm26_vm1, %v247_v50 }
 0x1df   :  { %351 = shalt.err (!%p348_p4)
}
 0x1e0   :  { %s352_s19 = scalar_lea.hbm %s462_s5, 256 }
 0x1e1   :  { %p353_p5 = scmp.ne.s32.totalorder %s462_s5, %s352_s19  ;;  %p356_p6 = scmp.lt.u32.totalorder %s352_s19, %s462_s5 }
 0x1e3   :  { %p358_p7 = pnand %p356_p6, %p353_p5 }
 0x1e5   :  { %361 = shalt.err (!%p358_p7)
}
 0x1e6   :  { %s367_s24 = smov 128   ;;  %s368_s25 = smov 8  }
 0x1e7   :  { %261 = dma.vmem_to_hbm [thread:$0]  %s256_s16, 256, %s462_s5, [#allocation4], %s367_s24, %s367_s24, %s368_s25  }
 0x1e8   :  { %362 = dma.done.wait [#allocation4], 256  }
 0x1e9   :  { %363 = vsyncadd [#allocation4], 4294967040 }
 0x1ea   :  { %265 = vsyncpa [#allocation4], 1 }

</bundles_post_ra>
